<compile_context>
chip_gen: v6e
topology: v6e:2x2x1
jax: 0.10.0
libtpu: 0.0.40
codegen_flags: <defaults>
</compile_context>

<pallas_src>
import jax
import jax.numpy as jnp
from jax.experimental import pallas as pl
from jax.experimental.pallas import tpu as pltpu


def pospool_mode1_kernel(xyz_ref, feat_ref, w_ref, b_ref, out_ref):
    # xyz_ref : (1, 3, NT)   feat_ref : (1, C, NT)
    # w_ref   : (C, 3)       b_ref    : (C, 1)
    x = xyz_ref[0]            # (3, NT), f32
    w = w_ref[...]            # (C, 3),  f32
    b = b_ref[...]            # (C, 1),  f32

    # K=3 channel mix as VPU broadcast FMAs (MXU would be >97% idle at K=3).
    pos = (w[:, 0:1] * x[0:1, :]
           + w[:, 1:2] * x[1:2, :]
           + w[:, 2:3] * x[2:3, :]
           + b)                                           # (C, NT), f32

    # Residual add in the feature dtype (bf16 stays bf16, f32 stays f32).
    out_ref[0] = (feat_ref[0] + pos.astype(feat_ref.dtype)).astype(out_ref.dtype)


def _pick_n_tile(N, C, itemsize):
    """Largest 128-multiple divisor of N whose double-buffered feature+out
    tiles fit a conservative VMEM budget (safe for v7x's smaller VMEM)."""
    if N % 128 != 0:
        return N  # full-array block (exempt from the (8,128) divisibility rule)
    budget = 24 * 1024 * 1024                     # ~24 MiB for 2x(feat+out) buffers
    max_by_vmem = budget // max(1, 4 * C * itemsize)
    cap = min(2048, max(128, max_by_vmem))
    best = 128
    t = 128
    while t <= min(N, cap):
        if N % t == 0:
            best = t
        t += 128
    return best


def pospool_abs_mode1(xyz, feature, w1, b1, w2, b2, *, n_tile=None):
    B, N, _ = xyz.shape
    _, C, _ = feature.shape

    # Fold Conv1d(3->3) then Conv1d(3->C) (both kernel_size=1) into one affine map.
    w_eff = jnp.dot(w2, w1)                                # (C, 3)
    b_eff = (jnp.dot(w2, b1) + b2).reshape(C, 1)           # (C, 1)

    # Lane-dense xyz layout for the kernel: [B, 3, N].
    xyz3n = jnp.transpose(xyz, (0, 2, 1)).astype(w_eff.dtype)

    if n_tile is None:
        n_tile = _pick_n_tile(N, C, jnp.dtype(feature.dtype).itemsize)
    assert N % n_tile == 0, "n_tile must divide N"
    num_n = N // n_tile

    itemsize = jnp.dtype(feature.dtype).itemsize
    cost = pl.CostEstimate(
        flops=7 * B * C * N,
        transcendentals=0,
        bytes_accessed=(2 * B * C * N * itemsize
                        + B * 3 * N * jnp.dtype(xyz3n.dtype).itemsize),
    )

    return pl.pallas_call(
        pospool_mode1_kernel,
        out_shape=jax.ShapeDtypeStruct((B, C, N), feature.dtype),
        grid_spec=pltpu.PrefetchScalarGridSpec(
            num_scalar_prefetch=0,
            grid=(num_n, B),      # N-tiles leading (the larger parallel axis)
            in_specs=[
                pl.BlockSpec((1, 3, n_tile), lambda n, b: (b, 0, n)),   # xyz [B,3,N]
                pl.BlockSpec((1, C, n_tile), lambda n, b: (b, 0, n)),   # feature
                pl.BlockSpec((C, 3), lambda n, b: (0, 0)),              # W_eff (resident)
                pl.BlockSpec((C, 1), lambda n, b: (0, 0)),              # b_eff (resident)
            ],
            out_specs=pl.BlockSpec((1, C, n_tile), lambda n, b: (b, 0, n)),
        ),
        compiler_params=pltpu.CompilerParams(
            dimension_semantics=("parallel", "parallel")),
        cost_estimate=cost,
    )(xyz3n, feature, w_eff, b_eff)


def pospool_abs_mode1_ref(xyz, feature, w1, b1, w2, b2):
    # Pure-JAX reference: two 1x1 conv1d on xyz^T [B,3,N] + residual.
    xyz_new = jnp.transpose(xyz, (0, 2, 1))                            # [B,3,N]
    h = jnp.einsum('oc,bcn->bon', w1, xyz_new) + b1[None, :, None]     # [B,3,N]
    y = jnp.einsum('oc,bcn->bon', w2, h) + b2[None, :, None]           # [B,C,N]
    return feature + y


def _run_case(key, B, N, C, n_tile=None):
    k_xyz, k_feat, k_w1, k_b1, k_w2, k_b2 = jax.random.split(key, 6)
    xyz = jax.random.normal(k_xyz, (B, N, 3), dtype=jnp.float32)
    feature = jax.random.normal(k_feat, (B, C, N), dtype=jnp.float32)
    w1 = jax.random.normal(k_w1, (3, 3), dtype=jnp.float32) * 0.5
    b1 = jax.random.normal(k_b1, (3,), dtype=jnp.float32) * 0.1
    w2 = jax.random.normal(k_w2, (C, 3), dtype=jnp.float32) * 0.5
    b2 = jax.random.normal(k_b2, (C,), dtype=jnp.float32) * 0.1

    out = pospool_abs_mode1(xyz, feature, w1, b1, w2, b2, n_tile=n_tile)
    out = jax.block_until_ready(out)
    ref = pospool_abs_mode1_ref(xyz, feature, w1, b1, w2, b2)
    assert out.shape == (B, C, N)
    assert jnp.allclose(out, ref, atol=1e-5, rtol=1e-5), \
        f"mismatch vs reference (B={B}, N={N}, C={C}, n_tile={n_tile})"


if __name__ == "__main__":
    key = jax.random.PRNGKey(0)
    k0, k1 = jax.random.split(key, 2)

    # Small full-block case (block shapes == full array dims).
    _run_case(k0, B=2, N=16, C=4)

    # Lane-dense tiled case exercising the (num_n, B) grid with 128-wide tiles.
    _run_case(k1, B=2, N=256, C=8, n_tile=128)

    # TODO(synk): modes 2/3/4 (feature-dependent / sinusoidal position embeddings)
    # are not implemented; only the default mode=1 path is translated.
    print("KERNEL_OK")
</pallas_src>

<mosaic_0001>
module attributes {stable_mosaic.version = 11 : i64} {
  func.func @pospool_mode1_kernel(%arg0: i32, %arg1: i32, %arg2: memref<1x3x16xf32, #tpu.memory_space<vmem>>, %arg3: memref<1x4x16xf32, #tpu.memory_space<vmem>>, %arg4: memref<4x3xf32, #tpu.memory_space<vmem>>, %arg5: memref<4x1xf32, #tpu.memory_space<vmem>>, %arg6: memref<1x4x16xf32, #tpu.memory_space<vmem>>) attributes {dimension_semantics = [#tpu.dimension_semantics<parallel>, #tpu.dimension_semantics<parallel>], iteration_bounds = array<i64: 1, 2>, scalar_prefetch = 0 : i64, scratch_operands = 0 : i64, tpu.core_type = #tpu.core_type<tc>, window_params = [{transform_indices = @transform_0, window_bounds = array<i64: 1, 3, 16>}, {transform_indices = @transform_1, window_bounds = array<i64: 1, 4, 16>}, {pipeline_mode = #tpu.pipeline_mode<synchronous>, transform_indices = @transform_2, window_bounds = array<i64: 4, 3>}, {pipeline_mode = #tpu.pipeline_mode<synchronous>, transform_indices = @transform_3, window_bounds = array<i64: 4, 1>}, {transform_indices = @transform_4, window_bounds = array<i64: 1, 4, 16>}]} {
    %c0 = arith.constant 0 : index
    %c0_0 = arith.constant 0 : index
    %c0_1 = arith.constant 0 : index
    %0 = vector.load %arg2[%c0, %c0_0, %c0_1] : memref<1x3x16xf32, #tpu.memory_space<vmem>>, vector<1x3x16xf32>
    %1 = vector.shape_cast %0 : vector<1x3x16xf32> to vector<3x16xf32>
    %c0_2 = arith.constant 0 : index
    %c0_3 = arith.constant 0 : index
    %2 = vector.load %arg4[%c0_2, %c0_3] : memref<4x3xf32, #tpu.memory_space<vmem>>, vector<4x3xf32>
    %c0_4 = arith.constant 0 : index
    %c0_5 = arith.constant 0 : index
    %3 = vector.load %arg5[%c0_4, %c0_5] : memref<4x1xf32, #tpu.memory_space<vmem>>, vector<4x1xf32>
    %4 = vector.extract_strided_slice %2 {offsets = [0, 0], sizes = [4, 1], strides = [1, 1]} : vector<4x3xf32> to vector<4x1xf32>
    %5 = vector.extract_strided_slice %1 {offsets = [0, 0], sizes = [1, 16], strides = [1, 1]} : vector<3x16xf32> to vector<1x16xf32>
    %6 = vector.broadcast %4 : vector<4x1xf32> to vector<4x16xf32>
    %7 = vector.broadcast %5 : vector<1x16xf32> to vector<4x16xf32>
    %8 = arith.mulf %6, %7 : vector<4x16xf32>
    %9 = vector.extract_strided_slice %2 {offsets = [0, 1], sizes = [4, 1], strides = [1, 1]} : vector<4x3xf32> to vector<4x1xf32>
    %10 = vector.extract_strided_slice %1 {offsets = [1, 0], sizes = [1, 16], strides = [1, 1]} : vector<3x16xf32> to vector<1x16xf32>
    %11 = vector.broadcast %9 : vector<4x1xf32> to vector<4x16xf32>
    %12 = vector.broadcast %10 : vector<1x16xf32> to vector<4x16xf32>
    %13 = arith.mulf %11, %12 : vector<4x16xf32>
    %14 = arith.addf %8, %13 : vector<4x16xf32>
    %15 = vector.extract_strided_slice %2 {offsets = [0, 2], sizes = [4, 1], strides = [1, 1]} : vector<4x3xf32> to vector<4x1xf32>
    %16 = vector.extract_strided_slice %1 {offsets = [2, 0], sizes = [1, 16], strides = [1, 1]} : vector<3x16xf32> to vector<1x16xf32>
    %17 = vector.broadcast %15 : vector<4x1xf32> to vector<4x16xf32>
    %18 = vector.broadcast %16 : vector<1x16xf32> to vector<4x16xf32>
    %19 = arith.mulf %17, %18 : vector<4x16xf32>
    %20 = arith.addf %14, %19 : vector<4x16xf32>
    %21 = vector.broadcast %3 : vector<4x1xf32> to vector<4x16xf32>
    %22 = arith.addf %20, %21 : vector<4x16xf32>
    %c0_6 = arith.constant 0 : index
    %c0_7 = arith.constant 0 : index
    %c0_8 = arith.constant 0 : index
    %23 = vector.load %arg3[%c0_6, %c0_7, %c0_8] : memref<1x4x16xf32, #tpu.memory_space<vmem>>, vector<1x4x16xf32>
    %24 = vector.shape_cast %23 : vector<1x4x16xf32> to vector<4x16xf32>
    %25 = arith.addf %24, %22 : vector<4x16xf32>
    %c0_9 = arith.constant 0 : index
    %c0_10 = arith.constant 0 : index
    %c0_11 = arith.constant 0 : index
    %26 = vector.load %arg6[%c0_9, %c0_10, %c0_11] : memref<1x4x16xf32, #tpu.memory_space<vmem>>, vector<1x4x16xf32>
    %27 = vector.shape_cast %26 : vector<1x4x16xf32> to vector<4x16xf32>
    %28 = vector.shape_cast %25 : vector<4x16xf32> to vector<1x4x16xf32>
    tpu.vector_store %arg6[%c0_9, %c0_10, %c0_11], %28 {strides = array<i32>} : memref<1x4x16xf32, #tpu.memory_space<vmem>>, vector<1x4x16xf32>,
    return
  }
  func.func @transform_0(%arg0: i32, %arg1: i32) -> (i32, i32, i32) {
    %c0_i32 = arith.constant 0 : i32
    %c0_i32_0 = arith.constant 0 : i32
    return %arg1, %c0_i32, %arg0 : i32, i32, i32
  }
  func.func @transform_1(%arg0: i32, %arg1: i32) -> (i32, i32, i32) {
    %c0_i32 = arith.constant 0 : i32
    %c0_i32_0 = arith.constant 0 : i32
    return %arg1, %c0_i32, %arg0 : i32, i32, i32
  }
  func.func @transform_2(%arg0: i32, %arg1: i32) -> (i32, i32) {
    %c0_i32 = arith.constant 0 : i32
    %c0_i32_0 = arith.constant 0 : i32
    %c0_i32_1 = arith.constant 0 : i32
    return %c0_i32, %c0_i32_0 : i32, i32
  }
  func.func @transform_3(%arg0: i32, %arg1: i32) -> (i32, i32) {
    %c0_i32 = arith.constant 0 : i32
    %c0_i32_0 = arith.constant 0 : i32
    %c0_i32_1 = arith.constant 0 : i32
    return %c0_i32, %c0_i32_0 : i32, i32
  }
  func.func @transform_4(%arg0: i32, %arg1: i32) -> (i32, i32, i32) {
    %c0_i32 = arith.constant 0 : i32
    %c0_i32_0 = arith.constant 0 : i32
    return %arg1, %c0_i32, %arg0 : i32, i32, i32
  }
}

</mosaic_0001>

<bundles_post_ra>
// kernel: tpu_custom_call.1
= control target key start
LH: loop header
LB: loop body
LE: loop exit
PB: predicated region body
PF: predicated region fallthrough
CT: control target
= control target key end

     0   :  { %9 = vsyncpa [#allocation3], 0  ;;  %s680_s0 = inlined_call_operand.vmem [shape: f32[2,3,16], index: 0, kind: input, shape index: {}]   ;;  %s681_s1 = inlined_call_operand.vmem [shape: f32[2,4,16], index: 1, kind: input, shape index: {}]   ;;  %s682_s2 = inlined_call_operand.vmem [shape: f32[4,3], index: 2, kind: input, shape index: {}]   ;;  %s683_s3 = inlined_call_operand.vmem [shape: f32[4,1], index: 3, kind: input, shape index: {}]   ;;  %s684_s4 = inlined_call_operand.hbm [shape: f32[2,4,16], index: 4, kind: output, shape index: {}]  }
   0x1   :  { %11 = vsyncpa [#allocation3 + $0x1], 0  ;;  %s572_s15 = smov 0   ;;  %s574_s16 = smov 0  }
   0x2   :  { %s576_s17 = smov 0   ;;  %s578_s18 = smov 0  }
   0x3   :  { %s580_s19 = smov 0   ;;  %s582_s20 = smov 0  }
   0x4 LB: > { %s390_s21 = sadd.s32 4294967295, %s541_s20   ;;  %s391_s22 = sadd.s32 4294967294, %s541_s20   ;;  %s541_s20 = sphi %s582_s20, %s17_s20   ;;  %s537_s19 = sphi %s580_s19, %s691_s19   ;;  %s533_s18 = sphi %s578_s18, %s690_s18   ;;  %s529_s17 = sphi %s576_s17, %s689_s17   ;;  %s525_s16 = sphi %s574_s16, %s688_s16   ;;  %s521_s15 = sphi %s572_s15, %s687_s15  }
   0x5   : > { %s26_s23 = sadd.s32 1, %s537_s19  ;;  %s136_s24 = sadd.s32 1, %s529_s17 }
   0x6   : > { %p27_p0 = scmp.ge.s32.totalorder %s26_s23, 2  ;;  %p146_p1 = scmp.ne.s32.totalorder %s529_s17, %s525_s16 }
   0x7   : > { %p147_p2 = scmp.eq.s32.totalorder %s390_s21, 1  ;;  %p152_p3 = scmp.ne.s32.totalorder %s525_s16, %s521_s15 }
   0x8   : > { %s693_s23 = smov (%p27_p0, %s26_s23), 0  ;;  %p153_p5 = scmp.eq.s32.totalorder %s391_s22, 1 }
   0x9   : > { %p612_p4 = por %p147_p2, %p146_p1  ;;  %s131_s26 = ssub.s32 %s537_s19, %s693_s23 }
   0xa   : > { %p394_p6 = scmp.ge.s32.totalorder %s541_s20, 1  ;;  %p134_p7 = scmp.eq.s32.totalorder %s131_s26, 0 }
   0xb   : > { %p619_p8 = por %p153_p5, %p152_p3  ;;  %p197_p9 = scmp.lt.s32.totalorder %s541_s20, 3 }
   0xc   : > { %s625_s28 = scalar_select %p134_p7, %s529_s17, %s136_s24  }
   0xd   : > { %p198_p10 = pnand %p394_p6, %p197_p9 }
   0xe   : > { %p232_p11 = scmp.lt.s32.totalorder (!%p198_p10), %s533_s18, 1  ;;  %s229_s12 = sand.u32 (!%p198_p10), 1, %s525_s16  }
   0xf   : > { %201 = sbr.rel (%p198_p10) target bundleno = 174 (0xae), region = 36  ;;  %s395_s13 = sshll.u32 (!%p198_p10), %s229_s12, 2 }
  0x10   : > { %s399_s24 = sshll.u32 (!%p198_p10), %s533_s18, 6  ;;  %s231_s26 = scalar_lea.vmem (!%p198_p10), [#allocation2], %s395_s13 }
  0x11   : > { %s304_s29 = sshll.u32 (!%p198_p10), %s231_s26, 4  ;;  %s302_s6 = scalar_lea.hbm (!%p198_p10), %s684_s4, %s399_s24  ;;  %s305_s29 = int_to_ptr.vmem [resolvable:$true] %s304_s29 }
  0x12   : > { %s465_s9 = scalar_lea.vmem (!%p198_p10), %s305_s29, 64 }
  0x13   : > { %p466_p12 = scmp.ne.s32.totalorder (!%p198_p10), %s305_s29, %s465_s9 }
  0x14   : > { %v247_v0 = vld [vmem:[%s682_s2] sm:$0xf]  ;;  %v543_v1 = vmov 0   ;;  %v544_v2 = vmov 2   ;;  %v545_v4 = vmov 1   ;;  %s233_s7 = scalar_select %p232_p11, %s533_s18, 1  ;;  %v254_v5 = vlaneseq }
  0x15   : > { %460 = vset.pattern.permute.xlu0 %v543_v1  ;;  %462 = vset.pattern.permute.xlu1 %v544_v2  ;;  %v248_v3 = vld [vmem:[%s683_s3] sm:$0xf]  ;;  %vm287_vm0 = vcmask 125952   ;;  %p467_p13 = pnand %p466_p12, %p612_p4 }
  0x16   : > { %251 = vperm.xlu0 %460, %v247_v0   ;;  %270 = vperm.xlu1 %462, %v247_v0   ;;  %s396_s8 = sshll.u32 %s233_s7, 2  ;;  %v255_v6 = vshrl.u32 %v254_v5, 7  ;;  %s290_s7 = scalar_lea.sflag [#allocation3], %s229_s12 }
  0x17   : > { %s238_s11 = scalar_lea.vmem %s680_s0, %s396_s8  ;;  %s245_s22 = scalar_lea.vmem %s681_s1, %s396_s8 }
  0x18   : > { %v256_v7 = vsub.s32 0, %v255_v6  ;;  %v265_v8 = vsub.s32 1, %v255_v6  ;;  %v275_v9 = vsub.s32 2, %v255_v6  ;;  %v246_v10 = vld [vmem:[%s238_s11] sm:$0x7]  ;;  %p468_p0 = pneg %p467_p13  ;;  %s546_s8 = smov [#allocation2]  }
  0x19   : > { %v285_v23 = vld [vmem:[%s245_s22] sm:$0xf]  ;;  %s469_s10 = sshll.u32 %s546_s8, 4  ;;  %s470_s10 = int_to_ptr.vmem [resolvable:$false] %s469_s10 }
  0x1a   : > { %461 = vset.pattern.permute.xlu0 %v545_v4  ;;  %463 = vset.pattern.permute.xlu1 %v543_v1  ;;  %v257_v12 = vrot.slane %v246_v10, %v256_v7  ;;  %v266_v13 = vrot.slane %v246_v10, %v265_v8  ;;  %v276_v14 = vrot.slane %v246_v10, %v275_v9  ;;  %s471_s18 = scalar_lea.vmem %s470_s10, 128  ;;  %p472_p1 = scmp.lt.s32.totalorder %s305_s29, %s470_s10 }
  0x1b   : > { %260 = vperm.xlu0 %461, %v247_v0   ;;  %281 = vperm.xlu1 %463, %v248_v3   ;;  %p473_p2 = scmp.lt.s32.totalorder %s471_s18, %s465_s9 }
  0x1d   : > { %p474_p3 = por %p473_p2, %p472_p1 }
  0x1f   : > { %464 = vset.pattern.permute.xlu0 %v543_v1  ;;  %p475_p5 = pnand %p474_p3, %p468_p0 }
  0x91   : > { %v252_v11 = vpop.permute.xlu0 %251  ;;  %v271_v15 = vpop.permute.xlu1 %270 }
  0x92   : > { %v258_v17 = vmul.f32 %v257_v12, %v252_v11  ;;  %v277_v19 = vmul.f32 %v276_v14, %v271_v15 }
  0x96   : > { %v261_v16 = vpop.permute.xlu0 %260  ;;  %v282_v21 = vpop.permute.xlu1 %281 }
  0x97   : > { %v267_v18 = vmul.f32 %v266_v13, %v261_v16 }
  0x99   : > { %v268_v20 = vadd.f32 %v267_v18, %v258_v17 }
  0x9b   : > { %v278_v22 = vadd.f32 %v277_v19, %v268_v20 }
  0x9d   : > { %v284_v24 = vadd.f32 %v282_v21, %v278_v22 }
  0x9f   : > { %v286_v25 = vadd.f32 %v285_v23, %v284_v24 }
  0xa1   : > { %288 = vst.msk [vmem:[%s231_s26] sm:$0xf] %vm287_vm0, %v286_v25 }
  0xa2   : > { %478 = shalt.err (!%p475_p5)
}
  0xa3   : > { %s479_s11 = scalar_lea.hbm %s302_s6, 64  ;;  %s483_s14 = scalar_lea.hbm %s684_s4, 128 }
  0xa4   : > { %p480_p6 = scmp.ne.s32.totalorder %s302_s6, %s479_s11  ;;  %p484_p10 = scmp.lt.s32.totalorder %s302_s6, %s684_s4 }
  0xa5   : > { %p485_p11 = scmp.lt.s32.totalorder %s483_s14, %s479_s11 }
  0xa6   : > { %p481_p7 = pnand %p480_p6, %p612_p4 }
  0xa7   : > { %p486_p12 = por %p485_p11, %p484_p10 }
  0xa8   : > { %p482_p9 = pneg %p481_p7 }
  0xaa   : > { %p487_p13 = pnand %p486_p12, %p482_p9 }
  0xac   : > { %490 = shalt.err (!%p487_p13)
}
  0xad   : > { %402 = dma.vmem_to_hbm [thread:$0]  (%p612_p4), %s305_s29, 64, %s302_s6, %s290_s7  }
  0xae PF: > { %p408_p0 = scmp.ge.s32.totalorder %s541_s20, 2  ;;  %s316_s24 = sand.u32 1, %s521_s15  }
  0xaf   : > { %s317_s26 = scalar_lea.sflag [#allocation3], %s316_s24 }
  0xb0   : > { %p405_p1 = pnand %p408_p0, %p619_p8 }
  0xb2   : > { %p406_p2 = pneg %p405_p1 }
  0xb4   : > { %516 = dma.done.wait (%p406_p2), %s317_s26, 64  }
  0xb5   : > { %518 = vsyncadd (%p406_p2), %s317_s26, 4294967232  ;;  %s17_s20 = sadd.s32 1, %s541_s20   ;;  %s687_s15 = smov %s525_s16 }
  0xb6   : > { %p14_p3 = scmp.ge.s32.totalorder %s17_s20, 4   ;;  %s688_s16 = smov %s529_s17 }
  0xb7   : > { %s689_s17 = smov %s625_s28  ;;  %s690_s18 = smov %s537_s19 }
  0xb8   : > { %s691_s19 = smov %s693_s23  ;;  %16 = sbr.rel (!%p14_p3) target bundleno = 4 (0x4), region = 74 }
  0xbd   :  { %322 = vsyncpa [#allocation3], 1 }
  0xbe   :  { %324 = vsyncpa [#allocation3 + $0x1], 1 }

</bundles_post_ra>
